<compile_context>
chip_gen: v7x
topology: tpu7x:2x2x1
jax: 0.10.0
libtpu: 0.0.40
codegen_flags: <defaults>
</compile_context>

<pallas_src>
import functools

import jax
import jax.numpy as jnp
from jax.experimental import pallas as pl
from jax.experimental.pallas import tpu as pltpu

_MASK_VALUE = -1e30                 # large finite negative (fallback path)
_VMEM_CAP_BYTES = 48 * 2**20        # v7x-safe cap (64 MiB/core total)


def _round_up(x, m):
    return ((x + m - 1) // m) * m


def _nt_xent_lse_kernel(zq_ref, zk_ref, lse_ref, l_scr, m_scr, *,
                        inv_t, n2, block_rows, block_cols, mxu_dtype,
                        static_max, needs_col_mask):
    """Per-row logsumexp of the masked NT-Xent logits, tiled over columns."""
    qi = pl.program_id(0)
    ki = pl.program_id(1)
    nk = pl.num_programs(1)

    @pl.when(ki == 0)
    def _init():
        l_scr[...] = jnp.zeros_like(l_scr)
        if not static_max:
            m_scr[...] = jnp.full_like(m_scr, _MASK_VALUE)

    # Rows are pre-normalized in the wrapper; feed the MXU directly
    # (contract the feature axis, no transpose).
    logits = jax.lax.dot_general(
        zq_ref[...].astype(mxu_dtype), zk_ref[...].astype(mxu_dtype),
        dimension_numbers=(((1,), (1,)), ((), ())),
        preferred_element_type=jnp.float32,
    ) * inv_t

    # Invalid entries: self-similarity diagonal (+ padded columns).
    # Single difference-iota keeps the VPU filler minimal.
    diff = ((qi * block_rows - ki * block_cols)
            + jax.lax.broadcasted_iota(jnp.int32, logits.shape, 0)
            - jax.lax.broadcasted_iota(jnp.int32, logits.shape, 1))
    invalid = diff == 0
    if needs_col_mask:
        col_ids = ki * block_cols + jax.lax.broadcasted_iota(
            jnp.int32, logits.shape, 1)
        invalid = invalid | (col_ids >= n2)

    if static_max:
        # Unit-norm rows => logits <= 1/T; static max removes the per-tile
        # row-max reduce and the per-step exp() rescale entirely.
        p = jnp.where(invalid, 0.0, jnp.exp(logits - inv_t))
        l_scr[...] += jnp.sum(p, axis=-1, keepdims=True)

        @pl.when(ki == nk - 1)
        def _finalize():
            lse_ref[...] = inv_t + jnp.log(l_scr[...])
    else:
        # Online-softmax fallback for extreme temperatures (T < 0.05) where
        # exp(logit - 1/T) could underflow.
        s = jnp.where(invalid, _MASK_VALUE, logits)
        m_prev = m_scr[...]
        m_new = jnp.maximum(m_prev, jnp.max(s, axis=-1, keepdims=True))
        alpha = jnp.exp(m_prev - m_new)
        l_scr[...] = alpha * l_scr[...] + jnp.sum(
            jnp.exp(s - m_new), axis=-1, keepdims=True)
        m_scr[...] = m_new

        @pl.when(ki == nk - 1)
        def _finalize():
            lse_ref[...] = m_scr[...] + jnp.log(l_scr[...])


def contrastive_loss(z_i, z_j, temperature=0.4, block_rows=None,
                     block_cols=None, mxu_dtype=None):
    assert z_i.ndim == 2 and z_i.shape == z_j.shape
    n, d = z_i.shape
    n2 = 2 * n
    inv_t = 1.0 / float(temperature)

    # ---- cheap O(n*d) wrapper work (hoisted out of the kernel) -------------
    # Normalize once in f32 (matches F.normalize eps=1e-12); compute the
    # positive-pair ("picked") logits here as a rowwise dot with the partner.
    z = jnp.concatenate([z_i, z_j], axis=0).astype(jnp.float32)
    ss = jnp.sum(z * z, axis=-1, keepdims=True)
    zn = z * jax.lax.rsqrt(jnp.maximum(ss, 1e-24))
    partner = jnp.concatenate([zn[n:], zn[:n]], axis=0)      # partner[r]=zn[(r+n)%2n]
    picked = jnp.sum(zn * partner, axis=-1) * inv_t          # (2n,)

    # MXU / streaming dtype: bf16 inputs stay bf16; f32 inputs use bf16 only
    # when d is large enough for the MXU to matter (unit-norm rows -> tiny err).
    if mxu_dtype is None:
        mxu_dtype = jnp.bfloat16 if (z_i.dtype == jnp.bfloat16 or d >= 256) \
            else jnp.float32
    mxu_dtype = jnp.dtype(mxu_dtype)
    zs = zn.astype(mxu_dtype)
    isz = mxu_dtype.itemsize

    # ---- tile sizing --------------------------------------------------------
    full_cols = _round_up(n2, 128)
    if block_rows is None:
        # >= 2 row blocks whenever 2n > 128 so the "parallel" row axis shards
        # across both v7x TensorCores; 256-row tiles for larger batches.
        block_rows = 128 if n2 <= 256 else 256
    block_rows = min(_round_up(int(block_rows), 128), _round_up(n2, 128))

    if block_cols is None:
        # Keep the whole normalized key matrix VMEM-resident (keys DMA'd
        # exactly once) when it fits a modest budget; else stream 512-wide.
        block_cols = full_cols if 2 * full_cols * d * isz <= 12 * 2**20 else 512
    block_cols = min(_round_up(int(block_cols), 128), full_cols)

    def vmem_est(br, bc):
        return (2 * br * d * isz          # double-buffered query rows
                + 2 * bc * d * isz        # double-buffered key rows
                + 3 * br * bc * 4         # logits tile + exp/mask temporaries
                + 8 * br * 4 + (2 << 20))

    while vmem_est(block_rows, block_cols) > _VMEM_CAP_BYTES and block_cols > 128:
        block_cols = max(128, block_cols // 2)
    while vmem_est(block_rows, block_cols) > _VMEM_CAP_BYTES and block_rows > 128:
        block_rows = max(128, block_rows // 2)

    r_rows = _round_up(n2, block_rows)
    r_cols = _round_up(n2, block_cols)
    zq = jnp.pad(zs, ((0, r_rows - n2), (0, 0))) if r_rows != n2 else zs
    zk = jnp.pad(zs, ((0, r_cols - n2), (0, 0))) if r_cols != n2 else zs

    num_row_blocks = r_rows // block_rows
    num_col_blocks = r_cols // block_cols

    # Static max (1/T) is valid because rows are unit-norm; fall back to the
    # online-max path for extreme temperatures (underflow risk of exp(s-1/T)).
    static_max = float(temperature) >= 0.05

    kernel = functools.partial(
        _nt_xent_lse_kernel,
        inv_t=inv_t, n2=n2, block_rows=block_rows, block_cols=block_cols,
        mxu_dtype=mxu_dtype, static_max=static_max,
        needs_col_mask=(r_cols != n2))

    vmem_limit = int(min(max(int(1.3 * vmem_est(block_rows, block_cols)),
                             16 * 2**20), _VMEM_CAP_BYTES))

    key_streams = 1 if num_col_blocks == 1 else num_row_blocks
    cost = pl.CostEstimate(
        flops=int(2 * r_rows * r_cols * d),
        transcendentals=int(r_rows * r_cols + 2 * r_rows),
        bytes_accessed=int((r_rows + key_streams * r_cols) * d * isz + r_rows * 4),
    )

    lse = pl.pallas_call(
        kernel,
        out_shape=jax.ShapeDtypeStruct((r_rows, 1), jnp.float32),
        grid_spec=pltpu.PrefetchScalarGridSpec(
            num_scalar_prefetch=0,
            grid=(num_row_blocks, num_col_blocks),
            in_specs=[
                pl.BlockSpec((block_rows, d), lambda qi, ki: (qi, 0)),  # query rows
                pl.BlockSpec((block_cols, d), lambda qi, ki: (ki, 0)),  # key rows
            ],
            out_specs=pl.BlockSpec((block_rows, 1), lambda qi, ki: (qi, 0)),
            scratch_shapes=[
                pltpu.VMEM((block_rows, 1), jnp.float32),  # running sum
                pltpu.VMEM((block_rows, 1), jnp.float32),  # running max (fallback)
            ],
        ),
        compiler_params=pltpu.CompilerParams(
            dimension_semantics=("parallel", "arbitrary"),
            vmem_limit_bytes=vmem_limit,
        ),
        cost_estimate=cost,
    )(zq, zk)

    # Mean over the 2n (unpadded) rows == F.cross_entropy(..., 'mean').
    return jnp.sum(lse[:n2, 0] - picked) / n2


def _reference_loss(z_i, z_j, temperature=0.4):
    # Pure-JAX reference mirroring the PyTorch module.
    n = z_i.shape[0]
    z = jnp.concatenate([z_i, z_j], axis=0).astype(jnp.float32)
    zn = z / jnp.maximum(jnp.linalg.norm(z, axis=-1, keepdims=True), 1e-12)
    logits = (zn @ zn.T) / temperature
    logits = jnp.where(jnp.eye(2 * n, dtype=bool), -jnp.inf, logits)
    labels = jnp.concatenate([jnp.arange(n, 2 * n), jnp.arange(n)])
    lse = jax.nn.logsumexp(logits, axis=-1)
    picked = logits[jnp.arange(2 * n), labels]
    return jnp.mean(lse - picked)


if __name__ == "__main__":
    key = jax.random.PRNGKey(0)
    k1, k2, k3, k4, k5, k6, k7, k8 = jax.random.split(key, 8)

    # Small single-tile case (2n = 16, d = 32).
    n, d = 8, 32
    z_i = jax.random.normal(k1, (n, d), dtype=jnp.float32)
    z_j = jax.random.normal(k2, (n, d), dtype=jnp.float32)
    loss = jax.block_until_ready(contrastive_loss(z_i, z_j, temperature=0.4))
    ref = _reference_loss(z_i, z_j, temperature=0.4)
    assert jnp.allclose(loss, ref, rtol=1e-4, atol=1e-4), (loss, ref)

    # Multi-row-block + padded-column path: 2n = 192 -> 128-row tiles,
    # fully-resident 256-wide key block, padded columns masked.
    n, d = 96, 64
    z_i = jax.random.normal(k3, (n, d), dtype=jnp.float32)
    z_j = jax.random.normal(k4, (n, d), dtype=jnp.float32)
    loss = jax.block_until_ready(contrastive_loss(z_i, z_j, temperature=0.4))
    ref = _reference_loss(z_i, z_j, temperature=0.4)
    assert jnp.allclose(loss, ref, rtol=1e-4, atol=1e-4), (loss, ref)

    # Extreme-temperature fallback exercises the online-softmax path.
    n, d = 64, 32
    z_i = jax.random.normal(k5, (n, d), dtype=jnp.float32)
    z_j = jax.random.normal(k6, (n, d), dtype=jnp.float32)
    loss = jax.block_until_ready(
        contrastive_loss(z_i, z_j, temperature=0.02,
                         block_rows=128, block_cols=128))
    ref = _reference_loss(z_i, z_j, temperature=0.02)
    assert jnp.allclose(loss, ref, rtol=2e-4, atol=1e-3), (loss, ref)

    # bf16 inputs stay bf16 on the MXU (halved DMA + native MXU throughput).
    n, d = 64, 128
    z_i = jax.random.normal(k7, (n, d), dtype=jnp.float32).astype(jnp.bfloat16)
    z_j = jax.random.normal(k8, (n, d), dtype=jnp.float32).astype(jnp.bfloat16)
    loss = jax.block_until_ready(contrastive_loss(z_i, z_j, temperature=0.4))
    ref = _reference_loss(z_i, z_j, temperature=0.4)
    assert jnp.allclose(loss, ref, rtol=5e-3, atol=2e-2), (loss, ref)

    print("KERNEL_OK")
</pallas_src>

<mosaic_0001>
module attributes {stable_mosaic.version = 11 : i64} {
  func.func @_nt_xent_lse_kernel(%arg0: i32, %arg1: i32, %arg2: memref<128x32xf32, #tpu.memory_space<vmem>>, %arg3: memref<128x32xf32, #tpu.memory_space<vmem>>, %arg4: memref<128x1xf32, #tpu.memory_space<vmem>>, %arg5: memref<128x1xf32, #tpu.memory_space<vmem>>, %arg6: memref<128x1xf32, #tpu.memory_space<vmem>>) attributes {dimension_semantics = [#tpu.dimension_semantics<parallel>, #tpu.dimension_semantics<arbitrary>], iteration_bounds = array<i64: 1, 1>, scalar_prefetch = 0 : i64, scratch_operands = 2 : i64, tpu.core_type = #tpu.core_type<tc>, window_params = [{transform_indices = @transform_0, window_bounds = array<i64: 128, 32>}, {transform_indices = @transform_1, window_bounds = array<i64: 128, 32>}, {transform_indices = @transform_2, window_bounds = array<i64: 128, 1>}]} {
    %c0_i32 = arith.constant 0 : i32
    %0 = arith.cmpi eq, %arg1, %c0_i32 : i32
    %1 = arith.extui %0 : i1 to i32
    %c0_i32_0 = arith.constant 0 : i32
    %2 = arith.cmpi ne, %1, %c0_i32_0 : i32
    scf.if %2 {
      %cst_17 = arith.constant 0.000000e+00 : f32
      %38 = vector.broadcast %cst_17 : f32 to vector<128x1xf32>
      %c0_18 = arith.constant 0 : index
      %c0_19 = arith.constant 0 : index
      %39 = vector.load %arg5[%c0_18, %c0_19] : memref<128x1xf32, #tpu.memory_space<vmem>>, vector<128x1xf32>
      tpu.vector_store %arg5[%c0_18, %c0_19], %38 {strides = array<i32>} : memref<128x1xf32, #tpu.memory_space<vmem>>, vector<128x1xf32>,
    } else {
    }
    %c0 = arith.constant 0 : index
    %c0_1 = arith.constant 0 : index
    %3 = vector.load %arg2[%c0, %c0_1] : memref<128x32xf32, #tpu.memory_space<vmem>>, vector<128x32xf32>
    %c0_2 = arith.constant 0 : index
    %c0_3 = arith.constant 0 : index
    %4 = vector.load %arg3[%c0_2, %c0_3] : memref<128x32xf32, #tpu.memory_space<vmem>>, vector<128x32xf32>
    %cst = arith.constant dense<0.000000e+00> : vector<128x128xf32>
    %5 = tpu.matmul %3, %4, %cst {dimension_numbers = #tpu.dot_dimension_numbers<[1], [1], [0], [0], [0, 0, 1, 0], [], []>} : vector<128x32xf32>, vector<128x32xf32>, vector<128x128xf32> -> vector<128x128xf32>
    %cst_4 = arith.constant 2.500000e+00 : f32
    %6 = vector.broadcast %cst_4 : f32 to vector<128x128xf32>
    %7 = arith.mulf %5, %6 : vector<128x128xf32>
    %c128_i32 = arith.constant 128 : i32
    %8 = arith.muli %arg0, %c128_i32 : i32
    %c128_i32_5 = arith.constant 128 : i32
    %9 = arith.muli %arg1, %c128_i32_5 : i32
    %10 = arith.subi %8, %9 : i32
    %11 = tpu.iota {dimensions = array<i32: 0>} : vector<128x128xi32>
    %12 = vector.broadcast %10 : i32 to vector<128x128xi32>
    %13 = arith.addi %12, %11 : vector<128x128xi32>
    %14 = tpu.iota {dimensions = array<i32: 1>} : vector<128x128xi32>
    %15 = arith.subi %13, %14 : vector<128x128xi32>
    %c0_i32_6 = arith.constant 0 : i32
    %16 = vector.broadcast %c0_i32_6 : i32 to vector<128x128xi32>
    %17 = arith.cmpi eq, %15, %16 : vector<128x128xi32>
    %c128_i32_7 = arith.constant 128 : i32
    %18 = arith.muli %arg1, %c128_i32_7 : i32
    %19 = tpu.iota {dimensions = array<i32: 1>} : vector<128x128xi32>
    %20 = vector.broadcast %18 : i32 to vector<128x128xi32>
    %21 = arith.addi %20, %19 : vector<128x128xi32>
    %c16_i32 = arith.constant 16 : i32
    %22 = vector.broadcast %c16_i32 : i32 to vector<128x128xi32>
    %23 = arith.cmpi sge, %21, %22 : vector<128x128xi32>
    %24 = arith.ori %17, %23 : vector<128x128xi1>
    %cst_8 = arith.constant 2.500000e+00 : f32
    %25 = vector.broadcast %cst_8 : f32 to vector<128x128xf32>
    %26 = arith.subf %7, %25 : vector<128x128xf32>
    %27 = math.exp %26 : vector<128x128xf32>
    %cst_9 = arith.constant 0.000000e+00 : f32
    %28 = vector.broadcast %cst_9 : f32 to vector<128x128xf32>
    %29 = arith.select %24, %28, %27 : vector<128x128xi1>, vector<128x128xf32>
    %c0_10 = arith.constant 0 : index
    %c0_11 = arith.constant 0 : index
    %30 = vector.load %arg5[%c0_10, %c0_11] : memref<128x1xf32, #tpu.memory_space<vmem>>, vector<128x1xf32>
    %cst_12 = arith.constant dense<0.000000e+00> : vector<128xf32>
    %31 = vector.multi_reduction <add>, %29, %cst_12 [1] : vector<128x128xf32> to vector<128xf32>
    %32 = vector.shape_cast %31 : vector<128xf32> to vector<128x1xf32>
    %33 = arith.addf %30, %32 : vector<128x1xf32>
    %c0_13 = arith.constant 0 : index
    %c0_14 = arith.constant 0 : index
    %34 = vector.load %arg5[%c0_13, %c0_14] : memref<128x1xf32, #tpu.memory_space<vmem>>, vector<128x1xf32>
    tpu.vector_store %arg5[%c0_13, %c0_14], %33 {strides = array<i32>} : memref<128x1xf32, #tpu.memory_space<vmem>>, vector<128x1xf32>,
    %c0_i32_15 = arith.constant 0 : i32
    %35 = arith.cmpi eq, %arg1, %c0_i32_15 : i32
    %36 = arith.extui %35 : i1 to i32
    %c0_i32_16 = arith.constant 0 : i32
    %37 = arith.cmpi ne, %36, %c0_i32_16 : i32
    scf.if %37 {
      %c0_17 = arith.constant 0 : index
      %c0_18 = arith.constant 0 : index
      %38 = vector.load %arg5[%c0_17, %c0_18] : memref<128x1xf32, #tpu.memory_space<vmem>>, vector<128x1xf32>
      %39 = math.log %38 : vector<128x1xf32>
      %cst_19 = arith.constant 2.500000e+00 : f32
      %40 = vector.broadcast %cst_19 : f32 to vector<128x1xf32>
      %41 = arith.addf %40, %39 : vector<128x1xf32>
      %c0_20 = arith.constant 0 : index
      %c0_21 = arith.constant 0 : index
      %42 = vector.load %arg4[%c0_20, %c0_21] : memref<128x1xf32, #tpu.memory_space<vmem>>, vector<128x1xf32>
      tpu.vector_store %arg4[%c0_20, %c0_21], %41 {strides = array<i32>} : memref<128x1xf32, #tpu.memory_space<vmem>>, vector<128x1xf32>,
    } else {
    }
    return
  }
  func.func @transform_0(%arg0: i32, %arg1: i32) -> (i32, i32) {
    %c0_i32 = arith.constant 0 : i32
    %c0_i32_0 = arith.constant 0 : i32
    return %arg0, %c0_i32 : i32, i32
  }
  func.func @transform_1(%arg0: i32, %arg1: i32) -> (i32, i32) {
    %c0_i32 = arith.constant 0 : i32
    %c0_i32_0 = arith.constant 0 : i32
    return %arg1, %c0_i32 : i32, i32
  }
  func.func @transform_2(%arg0: i32, %arg1: i32) -> (i32, i32) {
    %c0_i32 = arith.constant 0 : i32
    %c0_i32_0 = arith.constant 0 : i32
    return %arg0, %c0_i32 : i32, i32
  }
}

</mosaic_0001>

<bundles_post_ra>
// kernel: tpu_custom_call.1
= control target key start
LH: loop header
LB: loop body
LE: loop exit
PB: predicated region body
PF: predicated region fallthrough
CT: control target
= control target key end

     0   :  { %vm64_vm0 = vcmask 261120   ;;  %vm15_vm2 = vcmask 7168   ;;  %v909_v41 = vmov 0.0   ;;  %v325_v42 = vlaneseq  ;;  %s1401_s1 = inlined_call_operand.vmem [shape: f32[128,32], index: 1, kind: input, shape index: {}]   ;;  %s1402_s0 = inlined_call_operand.vmem [shape: f32[128,32], index: 0, kind: input, shape index: {}]   ;;  %s1403_s2 = inlined_call_operand.vmem [shape: f32[128,1], index: 2, kind: output, shape index: {}]  }
   0x1   :  { %v48_v0 = vld [vmem:[%s1401_s1] sm:$0xff]  ;;  %v49_v1 = vld [vmem:[%s1401_s1 + $0x8] sm:$0xff]  ;;  %vm933_vm1 = vmpackc.low %vm64_vm0, %vm64_vm0  ;;  %25 = vst.msk [vmem:[#allocation2 + $0x48] sm:$0xff] %vm15_vm2, %v909_v41 }
   0x2   :  { %v780_v3 = vpack.c.bf16 %v49_v1, %v48_v0  ;;  %v50_v4 = vld [vmem:[%s1401_s1 + $0x10] sm:$0xff]  ;;  %v51_v5 = vld [vmem:[%s1401_s1 + $0x18] sm:$0xff]  ;;  %v32_v7 = vld [vmem:[%s1402_s0] sm:$0xff]  ;;  %16 = vst.msk [vmem:[#allocation2] sm:$0xff] %vm15_vm2, %v909_v41  ;;  %v1123_v43 = vshrl.u32 %v325_v42, 7  ;;  %v1126_v45 = vand.u32 127, %v325_v42 }
   0x3   :  { %v786_v6 = vpack.c.bf16 %v51_v5, %v50_v4  ;;  %v52_v8 = vld [vmem:[%s1401_s1 + $0x20] sm:$0xff]  ;;  %v53_v9 = vld [vmem:[%s1401_s1 + $0x28] sm:$0xff]  ;;  %756 = vmatprep.mubr.msk.f32.mxu0 %vm64_vm0, %v32_v7  ;;  %v54_v12 = vld [vmem:[%s1401_s1 + $0x30] sm:$0xff]  ;;  %17 = vst.msk [vmem:[#allocation2 + $0x8] sm:$0xff] %vm15_vm2, %v909_v41 }
   0x4   :  { %782 = vmatprep.subr.msk.bf16.mxu0 %vm933_vm1, %v780_v3  ;;  %828 = vmatprep.subr.msk.bf16.mxu1 %vm933_vm1, %v780_v3  ;;  %v40_v10 = vld [vmem:[%s1402_s0 + $0x40] sm:$0xff]  ;;  %v792_v11 = vpack.c.bf16 %v53_v9, %v52_v8  ;;  %v55_v13 = vld [vmem:[%s1401_s1 + $0x38] sm:$0xff]  ;;  %v57_v16 = vld [vmem:[%s1401_s1 + $0x48] sm:$0xff]  ;;  %18 = vst.msk [vmem:[#allocation2 + $0x10] sm:$0xff] %vm15_vm2, %v909_v41  ;;  %v335_v44 = vadd.s32 72, %v1123_v43  ;;  %v327_v48 = vadd.s32 8, %v1123_v43  ;;  %v361_v4 = vsub.s32 %v1123_v43, %v1126_v45 }
   0x5   :  { %785 = vmatpush3.bf16.xpose.msk.msra.mxu0 %vm933_vm1, %v780_v3  ;;  %836 = vmatpush3.bf16.xpose.msk.msra.mxu1 %vm933_vm1, %v780_v3  ;;  %v798_v14 = vpack.c.bf16 %v55_v13, %v54_v12  ;;  %v56_v15 = vld [vmem:[%s1401_s1 + $0x40] sm:$0xff]  ;;  %v58_v18 = vld [vmem:[%s1401_s1 + $0x50] sm:$0xff]  ;;  %v59_v19 = vld [vmem:[%s1401_s1 + $0x58] sm:$0xff]  ;;  %19 = vst.msk [vmem:[#allocation2 + $0x18] sm:$0xff] %vm15_vm2, %v909_v41  ;;  %v334_v55 = vadd.s32 64, %v1123_v43  ;;  %vm395_vm3 = vcmp.ge.s32.totalorder %v1126_v45, 16 }
   0x6   :  { %788 = vmatprep.subr.msk.bf16.mxu0 %vm933_vm1, %v786_v6  ;;  %829 = vmatprep.subr.msk.bf16.mxu1 %vm933_vm1, %v786_v6  ;;  %v804_v17 = vpack.c.bf16 %v57_v16, %v56_v15  ;;  %v810_v20 = vpack.c.bf16 %v59_v19, %v58_v18  ;;  %v60_v21 = vld [vmem:[%s1401_s1 + $0x60] sm:$0xff]  ;;  %v61_v22 = vld [vmem:[%s1401_s1 + $0x68] sm:$0xff]  ;;  %v62_v24 = vld [vmem:[%s1401_s1 + $0x70] sm:$0xff]  ;;  %20 = vst.msk [vmem:[#allocation2 + $0x20] sm:$0xff] %vm15_vm2, %v909_v41  ;;  %v329_v12 = vadd.s32 24, %v1123_v43  ;;  %vm1151_vm6 = vcmp.eq.s32.totalorder %v361_v4, 0 }
   0x7   :  { %768 = vmatprep.mubr.msk.f32.mxu1 %vm64_vm0, %v40_v10  ;;  %v816_v23 = vpack.c.bf16 %v61_v22, %v60_v21  ;;  %v63_v25 = vld [vmem:[%s1401_s1 + $0x78] sm:$0xff]  ;;  %v33_v27 = vld [vmem:[%s1402_s0 + $0x8] sm:$0xff]  ;;  %v34_v29 = vld [vmem:[%s1402_s0 + $0x10] sm:$0xff]  ;;  %21 = vst.msk [vmem:[#allocation2 + $0x28] sm:$0xff] %vm15_vm2, %v909_v41  ;;  %v370_v58 = vsub.s32 %v335_v44, %v1126_v45  ;;  %v362_v63 = vsub.s32 %v327_v48, %v1126_v45  ;;  %v337_v22 = vadd.s32 88, %v1123_v43 }
   0x8   :  { %v822_v26 = vpack.c.bf16 %v63_v25, %v62_v24  ;;  %v41_v28 = vld [vmem:[%s1402_s0 + $0x48] sm:$0xff]  ;;  %v42_v30 = vld [vmem:[%s1402_s0 + $0x50] sm:$0xff]  ;;  %v35_v31 = vld [vmem:[%s1402_s0 + $0x18] sm:$0xff]  ;;  %22 = vst.msk [vmem:[#allocation2 + $0x30] sm:$0xff] %vm15_vm2, %v909_v41  ;;  %v369_v8 = vsub.s32 %v334_v55, %v1126_v45 }
   0x9   :  { %v43_v32 = vld [vmem:[%s1402_s0 + $0x58] sm:$0xff]  ;;  %v36_v33 = vld [vmem:[%s1402_s0 + $0x20] sm:$0xff]  ;;  %v37_v35 = vld [vmem:[%s1402_s0 + $0x28] sm:$0xff]  ;;  %23 = vst.msk [vmem:[#allocation2 + $0x38] sm:$0xff] %vm15_vm2, %v909_v41  ;;  %vm1136_vm4 = vcmp.eq.s32.totalorder %v370_v58, 0  ;;  %vm1142_vm5 = vcmp.eq.s32.totalorder %v362_v63, 0 }
   0xa   :  { %v44_v34 = vld [vmem:[%s1402_s0 + $0x60] sm:$0xff]  ;;  %v45_v36 = vld [vmem:[%s1402_s0 + $0x68] sm:$0xff]  ;;  %v38_v37 = vld [vmem:[%s1402_s0 + $0x30] sm:$0xff]  ;;  %24 = vst.msk [vmem:[#allocation2 + $0x40] sm:$0xff] %vm15_vm2, %v909_v41  ;;  %vm1155_vm7 = vcmp.eq.s32.totalorder %v369_v8, 0  ;;  %v331_v58 = vadd.s32 40, %v1123_v43 }
   0xb   :  { %v46_v38 = vld [vmem:[%s1402_s0 + $0x70] sm:$0xff]  ;;  %v39_v39 = vld [vmem:[%s1402_s0 + $0x38] sm:$0xff]  ;;  %26 = vst.msk [vmem:[#allocation2 + $0x50] sm:$0xff] %vm15_vm2, %v909_v41  ;;  %27 = vst.msk [vmem:[#allocation2 + $0x58] sm:$0xff] %vm15_vm2, %v909_v41  ;;  %v330_v63 = vadd.s32 32, %v1123_v43 }
   0xc   :  { %v47_v40 = vld [vmem:[%s1402_s0 + $0x78] sm:$0xff]  ;;  %28 = vst.msk [vmem:[#allocation2 + $0x60] sm:$0xff] %vm15_vm2, %v909_v41  ;;  %29 = vst.msk [vmem:[#allocation2 + $0x68] sm:$0xff] %vm15_vm2, %v909_v41 }
   0xd   :  { %791 = vmatpush3.bf16.xpose.msk.msra.mxu0 %vm933_vm1, %v786_v6  ;;  %837 = vmatpush3.bf16.xpose.msk.msra.mxu1 %vm933_vm1, %v786_v6  ;;  %30 = vst.msk [vmem:[#allocation2 + $0x70] sm:$0xff] %vm15_vm2, %v909_v41  ;;  %31 = vst.msk [vmem:[#allocation2 + $0x78] sm:$0xff] %vm15_vm2, %v909_v41 }
   0xe   :  { %794 = vmatprep.subr.msk.bf16.mxu0 %vm933_vm1, %v792_v11  ;;  %830 = vmatprep.subr.msk.bf16.mxu1 %vm933_vm1, %v792_v11  ;;  %vm1163_vm8 = vmor %vm1142_vm5, %vm395_vm3 }
   0xf   :  { %vm1172_vm9 = vmor %vm1136_vm4, %vm395_vm3 }
  0x10   :  { %vm1193_vm12 = vmor %vm1151_vm6, %vm395_vm3 }
  0x11   :  { %vm1228_vm15 = vmor %vm1155_vm7, %vm395_vm3 }
  0x15   :  { %797 = vmatpush3.bf16.xpose.msk.msra.mxu0 %vm933_vm1, %v792_v11  ;;  %838 = vmatpush3.bf16.xpose.msk.msra.mxu1 %vm933_vm1, %v792_v11 }
  0x16   :  { %800 = vmatprep.subr.msk.bf16.mxu0 %vm933_vm1, %v798_v14  ;;  %831 = vmatprep.subr.msk.bf16.mxu1 %vm933_vm1, %v798_v14 }
  0x1d   :  { %803 = vmatpush3.bf16.xpose.msk.msra.mxu0 %vm933_vm1, %v798_v14  ;;  %839 = vmatpush3.bf16.xpose.msk.msra.mxu1 %vm933_vm1, %v798_v14 }
  0x1e   :  { %806 = vmatprep.subr.msk.bf16.mxu0 %vm933_vm1, %v804_v17  ;;  %832 = vmatprep.subr.msk.bf16.mxu1 %vm933_vm1, %v804_v17 }
  0x25   :  { %809 = vmatpush3.bf16.xpose.msk.msra.mxu0 %vm933_vm1, %v804_v17  ;;  %840 = vmatpush3.bf16.xpose.msk.msra.mxu1 %vm933_vm1, %v804_v17 }
  0x26   :  { %812 = vmatprep.subr.msk.bf16.mxu0 %vm933_vm1, %v810_v20  ;;  %833 = vmatprep.subr.msk.bf16.mxu1 %vm933_vm1, %v810_v20 }
  0x2d   :  { %815 = vmatpush3.bf16.xpose.msk.msra.mxu0 %vm933_vm1, %v810_v20  ;;  %841 = vmatpush3.bf16.xpose.msk.msra.mxu1 %vm933_vm1, %v810_v20 }
  0x2e   :  { %818 = vmatprep.subr.msk.bf16.mxu0 %vm933_vm1, %v816_v23  ;;  %834 = vmatprep.subr.msk.bf16.mxu1 %vm933_vm1, %v816_v23 }
  0x35   :  { %821 = vmatpush3.bf16.xpose.msk.msra.mxu0 %vm933_vm1, %v816_v23  ;;  %842 = vmatpush3.bf16.xpose.msk.msra.mxu1 %vm933_vm1, %v816_v23 }
  0x36   :  { %824 = vmatprep.subr.msk.bf16.mxu0 %vm933_vm1, %v822_v26  ;;  %835 = vmatprep.subr.msk.bf16.mxu1 %vm933_vm1, %v822_v26 }
  0x3d   :  { %827 = vmatpush3.bf16.xpose.msk.msra.mxu0 %vm933_vm1, %v822_v26  ;;  %843 = vmatpush3.bf16.xpose.msk.msra.mxu1 %vm933_vm1, %v822_v26 }
  0x44   :  { %757 = vmatmul.mubr.msk.f32.vlgmr.msra.gmra.mrb[0].mxu0 %vm64_vm0, %v33_v27  ;;  %769 = vmatmul.mubr.msk.f32.vlgmr.msra.gmra.mrb[0].mxu1 %vm64_vm0, %v41_v28  ;;  %v364_v28 = vsub.s32 %v329_v12, %v1126_v45 }
  0x45   :  { %759 = vmatprep.mubr.msk.f32.mxu0 %vm64_vm0, %v34_v29  ;;  %771 = vmatprep.mubr.msk.f32.mxu1 %vm64_vm0, %v42_v30  ;;  %v1148_v29 = vadd.s32 80, %v1123_v43 }
  0x46   :  { %vm1176_vm10 = vcmp.eq.s32.totalorder %v364_v28, 0 }
  0x47   :  { %vm1204_vm13 = vmor %vm1176_vm10, %vm395_vm3 }
  0x48   :  { %760 = vmatmul.mubr.msk.f32.gmra.mrb[2].mxu0 %vm64_vm0, %v35_v31  ;;  %772 = vmatmul.mubr.msk.f32.gmra.mrb[2].mxu1 %vm64_vm0, %v43_v32 }
  0x49   :  { %762 = vmatprep.mubr.msk.f32.mxu0 %vm64_vm0, %v36_v33  ;;  %774 = vmatprep.mubr.msk.f32.mxu1 %vm64_vm0, %v44_v34 }
  0x4c   :  { %763 = vmatmul.mubr.msk.f32.gmra.mrb[4].mxu0 %vm64_vm0, %v37_v35  ;;  %775 = vmatmul.mubr.msk.f32.gmra.mrb[4].mxu1 %vm64_vm0, %v45_v36 }
  0x4d   :  { %765 = vmatprep.mubr.msk.f32.mxu0 %vm64_vm0, %v38_v37  ;;  %777 = vmatprep.mubr.msk.f32.mxu1 %vm64_vm0, %v46_v38  ;;  %v372_v38 = vsub.s32 %v337_v22, %v1126_v45 }
  0x4f   :  { %vm1180_vm11 = vcmp.eq.s32.totalorder %v372_v38, 0 }
  0x50   :  { %766 = vmatmul.mubr.msk.f32.gmra.mrb[6].mxu0 %vm64_vm0, %v39_v39  ;;  %778 = vmatmul.mubr.msk.f32.gmra.mrb[6].mxu1 %vm64_vm0, %v47_v40  ;;  %vm1218_vm14 = vmor %vm1180_vm11, %vm395_vm3  ;;  %v489_v40 = vld [vmem:[#allocation2 + $0x68] sm:$0xff] }
 0x117   :  { %v758_v46 = vpop.f32.mrb[0].mxu0  ;;  %v770_v47 = vpop.f32.mrb[0].mxu1 }
 0x118   :  { %v307_v49 = vmul.f32 2.5, %v758_v46  ;;  %v315_v50 = vmul.f32 2.5, %v770_v47  ;;  %v227_v51 = vpop.f32.mrb[1].mxu0  ;;  %v267_v52 = vpop.f32.mrb[1].mxu1  ;;  %v340_v47 = vadd.s32 112, %v1123_v43 }
 0x119   :  { %v306_v53 = vmul.f32 2.5, %v227_v51  ;;  %v314_v54 = vmul.f32 2.5, %v267_v52 }
 0x11a   :  { %v677_v56 = vadd.f32 -2.5, %v307_v49  ;;  %v685_v57 = vadd.f32 -2.5, %v315_v50  ;;  %v328_v49 = vadd.s32 16, %v1123_v43 }
 0x11b   :  { %v676_v59 = vadd.f32 -2.5, %v306_v53  ;;  %v684_v60 = vadd.f32 -2.5, %v314_v54  ;;  %v761_v61 = vpop.f32.mrb[2].mxu0  ;;  %v773_v62 = vpop.f32.mrb[2].mxu1  ;;  %v483_v54 = vld [vmem:[#allocation2 + $0x38] sm:$0xff] }
 0x11c   :  { %v430_v0 = vmul.f32 1.442695, %v677_v56  ;;  %v446_v1 = vmul.f32 1.442695, %v685_v57  ;;  %v309_v2 = vmul.f32 2.5, %v761_v61  ;;  %v237_v3 = vpop.f32.mrb[3].mxu0  ;;  %v371_v57 = vsub.s32 %v1148_v29, %v1126_v45 }
 0x11d   :  { %v428_v5 = vmul.f32 1.442695, %v676_v59  ;;  %v308_v6 = vmul.f32 2.5, %v237_v3  ;;  %v317_v7 = vmul.f32 2.5, %v773_v62  ;;  %v277_v10 = vpop.f32.mrb[3].mxu1  ;;  %v375_v56 = vsub.s32 %v340_v47, %v1126_v45 }
 0x11e   :  { %845 = vpow2.f32 %v430_v0  ;;  %v679_v9 = vadd.f32 -2.5, %v309_v2  ;;  %v444_v13 = vmul.f32 1.442695, %v684_v60  ;;  %v316_v15 = vmul.f32 2.5, %v277_v10 }
 0x11f   :  { %847 = vpow2.f32 %v446_v1  ;;  %v687_v14 = vadd.f32 -2.5, %v317_v7  ;;  %v764_v16 = vpop.f32.mrb[4].mxu0  ;;  %v776_v17 = vpop.f32.mrb[4].mxu1  ;;  %v678_v23 = vadd.f32 -2.5, %v308_v6  ;;  %v339_v10 = vadd.s32 104, %v1123_v43 }
 0x120   :  { %849 = vpow2.f32 %v428_v5  ;;  %v434_v18 = vmul.f32 1.442695, %v679_v9  ;;  %v311_v19 = vmul.f32 2.5, %v764_v16  ;;  %v247_v20 = vpop.f32.mrb[5].mxu0  ;;  %v287_v21 = vpop.f32.mrb[5].mxu1  ;;  %v686_v25 = vadd.f32 -2.5, %v316_v15 }
 0x121   :  { %v450_v24 = vmul.f32 1.442695, %v687_v14  ;;  %v310_v27 = vmul.f32 2.5, %v247_v20  ;;  %v319_v31 = vmul.f32 2.5, %v776_v17  ;;  %v318_v32 = vmul.f32 2.5, %v287_v21 }
 0x122   :  { %851 = vpow2.f32 %v434_v18  ;;  %v681_v30 = vadd.f32 -2.5, %v311_v19  ;;  %v448_v35 = vmul.f32 1.442695, %v686_v25  ;;  %v432_v39 = vmul.f32 1.442695, %v678_v23 }
 0x123   :  { %853 = vpow2.f32 %v444_v13  ;;  %v767_v33 = vpop.f32.mrb[6].mxu0  ;;  %v779_v34 = vpop.f32.mrb[6].mxu1  ;;  %v680_v36 = vadd.f32 -2.5, %v310_v27  ;;  %v688_v46 = vadd.f32 -2.5, %v318_v32  ;;  %v689_v51 = vadd.f32 -2.5, %v319_v31 }
 0x124   :  { %855 = vpow2.f32 %v450_v24  ;;  %v257_v37 = vpop.f32.mrb[7].mxu0  ;;  %v297_v41 = vpop.f32.mrb[7].mxu1  ;;  %v438_v50 = vmul.f32 1.442695, %v681_v30  ;;  %v313_v53 = vmul.f32 2.5, %v767_v33  ;;  %v321_v7 = vmul.f32 2.5, %v779_v34 }
 0x125   :  { %v436_v44 = vmul.f32 1.442695, %v680_v36  ;;  %v312_v48 = vmul.f32 2.5, %v257_v37  ;;  %857 = vpow2.f32 %v448_v35  ;;  %v320_v62 = vmul.f32 2.5, %v297_v41 }
 0x126   :  { %859 = vpow2.f32 %v432_v39  ;;  %v452_v2 = vmul.f32 1.442695, %v688_v46  ;;  %v454_v5 = vmul.f32 1.442695, %v689_v51  ;;  %v683_v6 = vadd.f32 -2.5, %v313_v53 }
 0x127   :  { %861 = vpow2.f32 %v436_v44  ;;  %v682_v4 = vadd.f32 -2.5, %v312_v48  ;;  %v363_v9 = vsub.s32 %v328_v49, %v1126_v45  ;;  %v365_v15 = vsub.s32 %v330_v63, %v1126_v45 }
 0x128   :  { %v846_v55 = vpop.eup %845  ;;  %863 = vpow2.f32 %v438_v50  ;;  %v338_v16 = vadd.s32 96, %v1123_v43  ;;  %v690_v19 = vadd.f32 -2.5, %v320_v62  ;;  %v366_v21 = vsub.s32 %v331_v58, %v1126_v45 }
 0x129   :  { %v848_v59 = vpop.eup %847  ;;  %v461_v60 = vsel %vm1163_vm8, 0.0, %v846_v55  ;;  %865 = vpow2.f32 %v452_v2  ;;  %v440_v18 = vmul.f32 1.442695, %v682_v4  ;;  %v442_v22 = vmul.f32 1.442695, %v683_v6  ;;  %v477_v4 = vld [vmem:[#allocation2 + $0x8] sm:$0xff] }
 0x12a   :  { %v850_v0 = vpop.eup %849  ;;  %v469_v1 = vsel %vm1172_vm9, 0.0, %v848_v59  ;;  %494 = vadd.xlane.f32.xlu0 %v461_v60  ;;  %867 = vpow2.f32 %v454_v5  ;;  %v691_v23 = vadd.f32 -2.5, %v321_v7  ;;  %vm387_vm0 = vcmp.eq.s32.totalorder %v371_v57, 0  ;;  %v485_v5 = vld [vmem:[#allocation2 + $0x48] sm:$0xff] }
 0x12b   :  { %510 = vadd.xlane.f32.xlu1 %v469_v1  ;;  %v460_v12 = vsel %vm1193_vm12, 0.0, %v850_v0  ;;  %vm1235_vm1 = vcmp.eq.s32.totalorder %v363_v9, 0  ;;  %v374_v26 = vsub.s32 %v339_v10, %v1126_v45  ;;  %vm1242_vm4 = vcmp.eq.s32.totalorder %v365_v15, 0  ;;  %vm1250_vm5 = vmor %vm387_vm0, %vm395_vm3  ;;  %v476_v10 = vld [vmem:[#allocation2] sm:$0xff] }
 0x12c   :  { %v852_v8 = vpop.eup %851  ;;  %v373_v29 = vsub.s32 %v338_v16, %v1126_v45  ;;  %v332_v30 = vadd.s32 48, %v1123_v43  ;;  %869 = vpow2.f32 %v440_v18  ;;  %v456_v32 = vmul.f32 1.442695, %v690_v19  ;;  %vm1259_vm7 = vmor %vm1235_vm1, %vm395_vm3  ;;  %v484_v15 = vld [vmem:[#allocation2 + $0x40] sm:$0xff]  ;;  %v487_v16 = vld [vmem:[#allocation2 + $0x58] sm:$0xff] }
 0x12d   :  { %v854_v11 = vpop.eup %853  ;;  %v463_v13 = vsel %vm1204_vm13, 0.0, %v852_v8  ;;  %vm382_vm6 = vcmp.eq.s32.totalorder %v366_v21, 0  ;;  %v333_v34 = vadd.s32 56, %v1123_v43  ;;  %871 = vpow2.f32 %v442_v22  ;;  %vm1267_vm8 = vmor %vm1242_vm4, %vm395_vm3  ;;  %v486_v22 = vld [vmem:[#allocation2 + $0x50] sm:$0xff] }
 0x12e   :  { %v856_v17 = vpop.eup %855  ;;  %492 = vadd.xlane.f32.xlu0 %v460_v12  ;;  %v468_v27 = vsel %vm1228_vm15, 0.0, %v854_v11  ;;  %v458_v36 = vmul.f32 1.442695, %v691_v23  ;;  %vm1271_vm9 = vcmp.eq.s32.totalorder %v374_v26, 0  ;;  %vm1279_vm10 = vmor %vm382_vm6, %vm395_vm3  ;;  %vm389_vm11 = vcmp.eq.s32.totalorder %v373_v29, 0  ;;  %v479_v11 = vld [vmem:[#allocation2 + $0x18] sm:$0xff] }
 0x12f   :  { %498 = vadd.xlane.f32.xlu1 %v463_v13  ;;  %v471_v24 = vsel %vm1218_vm14, 0.0, %v856_v17  ;;  %v858_v31 = vpop.eup %857  ;;  %v367_v46 = vsub.s32 %v332_v30, %v1126_v45  ;;  %873 = vpow2.f32 %v456_v32  ;;  %v368_v49 = vsub.s32 %v333_v34, %v1126_v45  ;;  %vm1295_vm12 = vmor %vm389_vm11, %vm395_vm3  ;;  %v480_v30 = vld [vmem:[#allocation2 + $0x20] sm:$0xff]  ;;  %v481_v32 = vld [vmem:[#allocation2 + $0x28] sm:$0xff] }
 0x130   :  { %v860_v35 = vpop.eup %859  ;;  %v470_v42 = vsel %vm1250_vm5, 0.0, %v858_v31  ;;  %v341_v50 = vadd.s32 120, %v1123_v43  ;;  %875 = vpow2.f32 %v458_v36  ;;  %vm1303_vm13 = vmor %vm1271_vm9, %vm395_vm3  ;;  %vm391_vm4 = vcmp.eq.s32.totalorder %v375_v56, 0 }
 0x131   :  { %v862_v38 = vpop.eup %861  ;;  %v462_v48 = vsel %vm1259_vm7, 0.0, %v860_v35  ;;  %vm383_vm14 = vcmp.eq.s32.totalorder %v367_v46, 0  ;;  %vm384_vm15 = vcmp.eq.s32.totalorder %v368_v49, 0  ;;  %vm410_vm6 = vmor %vm391_vm4, %vm395_vm3 }
 0x132   :  { %508 = vadd.xlane.f32.xlu0 %v468_v27  ;;  %v864_v41 = vpop.eup %863  ;;  %v464_v51 = vsel %vm1267_vm8, 0.0, %v862_v38  ;;  %v376_v57 = vsub.s32 %v341_v50, %v1126_v45  ;;  %vm402_vm0 = vmor %vm383_vm14, %vm395_vm3  ;;  %v488_v38 = vld [vmem:[#allocation2 + $0x60] sm:$0xff] }
 0x133   :  { %514 = vadd.xlane.f32.xlu1 %v471_v24  ;;  %v866_v52 = vpop.eup %865  ;;  %v465_v53 = vsel %vm1279_vm10, 0.0, %v864_v41  ;;  %vm403_vm1 = vmor %vm384_vm15, %vm395_vm3  ;;  %v478_v24 = vld [vmem:[#allocation2 + $0x10] sm:$0xff] }
 0x134   :  { %v868_v55 = vpop.eup %867  ;;  %v472_v58 = vsel %vm1295_vm12, 0.0, %v866_v52  ;;  %vm392_vm5 = vcmp.eq.s32.totalorder %v376_v57, 0 }
 0x135   :  { %v473_v60 = vsel %vm1303_vm13, 0.0, %v868_v55  ;;  %vm411_vm7 = vmor %vm392_vm5, %vm395_vm3 }
 0x136   :  { %512 = vadd.xlane.f32.xlu0 %v470_v42  ;;  %v870_v59 = vpop.eup %869 }
 0x137   :  { %496 = vadd.xlane.f32.xlu1 %v462_v48  ;;  %v872_v61 = vpop.eup %871  ;;  %v466_v62 = vsel %vm402_vm0, 0.0, %v870_v59 }
 0x138   :  { %v467_v0 = vsel %vm403_vm1, 0.0, %v872_v61 }
 0x139   :  { %v874_v63 = vpop.eup %873 }
 0x13a   :  { %500 = vadd.xlane.f32.xlu0 %v464_v51  ;;  %v876_v1 = vpop.eup %875  ;;  %v474_v2 = vsel %vm410_vm6, 0.0, %v874_v63  ;;  %v482_v51 = vld [vmem:[#allocation2 + $0x30] sm:$0xff] }
 0x13b   :  { %502 = vadd.xlane.f32.xlu1 %v465_v53  ;;  %v475_v3 = vsel %vm411_vm7, 0.0, %v876_v1 }
 0x13e   :  { %516 = vadd.xlane.f32.xlu0 %v472_v58 }
 0x13f   :  { %518 = vadd.xlane.f32.xlu1 %v473_v60 }
 0x142   :  { %504 = vadd.xlane.f32.xlu0 %v466_v62 }
 0x143   :  { %506 = vadd.xlane.f32.xlu1 %v467_v0  ;;  %v490_v0 = vld [vmem:[#allocation2 + $0x70] sm:$0xff] }
 0x146   :  { %520 = vadd.xlane.f32.xlu0 %v474_v2 }
 0x147   :  { %522 = vadd.xlane.f32.xlu1 %v475_v3  ;;  %v491_v3 = vld [vmem:[#allocation2 + $0x78] sm:$0xff] }
 0x1b7   :  { %v495_v6 = vpop.xlane.xlu0 %494 }
 0x1b8   :  { %v511_v7 = vpop.xlane.xlu1 %510  ;;  %v525_v8 = vadd.f32 %v495_v6, %v477_v4 }
 0x1b9   :  { %v533_v9 = vadd.f32 %v511_v7, %v485_v5 }
 0x1ba   :  { %542 = vst.msk [vmem:[#allocation2 + $0x8] sm:$0xff] %vm15_vm2, %v525_v8 }
 0x1bb   :  { %550 = vst.msk [vmem:[#allocation2 + $0x48] sm:$0xff] %vm15_vm2, %v533_v9  ;;  %v493_v45 = vpop.xlane.xlu0 %492 }
 0x1bc   :  { %v524_v12 = vadd.f32 %v493_v45, %v476_v10  ;;  %v499_v13 = vpop.xlane.xlu1 %498 }
 0x1bd   :  { %v527_v14 = vadd.f32 %v499_v13, %v479_v11 }
 0x1be   :  { %541 = vst.msk [vmem:[#allocation2] sm:$0xff] %vm15_vm2, %v524_v12 }
 0x1bf   :  { %544 = vst.msk [vmem:[#allocation2 + $0x18] sm:$0xff] %vm15_vm2, %v527_v14  ;;  %v509_v17 = vpop.xlane.xlu0 %508 }
 0x1c0   :  { %v532_v18 = vadd.f32 %v509_v17, %v484_v15  ;;  %v515_v19 = vpop.xlane.xlu1 %514 }
 0x1c1   :  { %v561_v20 = vld [vmem:[#allocation2 + $0x8] sm:$0xff]  ;;  %v535_v21 = vadd.f32 %v515_v19, %v487_v16 }
 0x1c2   :  { %v569_v23 = vld [vmem:[#allocation2 + $0x48] sm:$0xff]  ;;  %877 = vlog2.f32 %v561_v20  ;;  %549 = vst.msk [vmem:[#allocation2 + $0x40] sm:$0xff] %vm15_vm2, %v532_v18 }
 0x1c3   :  { %879 = vlog2.f32 %v569_v23  ;;  %552 = vst.msk [vmem:[#allocation2 + $0x58] sm:$0xff] %vm15_vm2, %v535_v21  ;;  %v513_v25 = vpop.xlane.xlu0 %512 }
 0x1c4   :  { %v534_v26 = vadd.f32 %v513_v25, %v486_v22  ;;  %v497_v27 = vpop.xlane.xlu1 %496 }
 0x1c5   :  { %v560_v28 = vld [vmem:[#allocation2] sm:$0xff]  ;;  %v526_v29 = vadd.f32 %v497_v27, %v478_v24 }
 0x1c6   :  { %881 = vlog2.f32 %v560_v28  ;;  %v563_v31 = vld [vmem:[#allocation2 + $0x18] sm:$0xff]  ;;  %551 = vst.msk [vmem:[#allocation2 + $0x50] sm:$0xff] %vm15_vm2, %v534_v26 }
 0x1c7   :  { %883 = vlog2.f32 %v563_v31  ;;  %543 = vst.msk [vmem:[#allocation2 + $0x10] sm:$0xff] %vm15_vm2, %v526_v29  ;;  %v501_v33 = vpop.xlane.xlu0 %500 }
 0x1c8   :  { %v503_v34 = vpop.xlane.xlu1 %502  ;;  %v528_v35 = vadd.f32 %v501_v33, %v480_v30 }
 0x1c9   :  { %v568_v36 = vld [vmem:[#allocation2 + $0x40] sm:$0xff]  ;;  %v529_v37 = vadd.f32 %v503_v34, %v481_v32 }
 0x1ca   :  { %885 = vlog2.f32 %v568_v36  ;;  %v571_v39 = vld [vmem:[#allocation2 + $0x58] sm:$0xff]  ;;  %545 = vst.msk [vmem:[#allocation2 + $0x20] sm:$0xff] %vm15_vm2, %v528_v35 }
 0x1cb   :  { %887 = vlog2.f32 %v571_v39  ;;  %546 = vst.msk [vmem:[#allocation2 + $0x28] sm:$0xff] %vm15_vm2, %v529_v37  ;;  %v517_v41 = vpop.xlane.xlu0 %516 }
 0x1cc   :  { %v878_v42 = vpop.eup %877  ;;  %v519_v44 = vpop.xlane.xlu1 %518  ;;  %v536_v46 = vadd.f32 %v517_v41, %v488_v38 }
 0x1cd   :  { %v880_v47 = vpop.eup %879  ;;  %v579_v48 = vmul.f32 0.6931472, %v878_v42  ;;  %v570_v49 = vld [vmem:[#allocation2 + $0x50] sm:$0xff]  ;;  %v537_v50 = vadd.f32 %v519_v44, %v489_v40 }
 0x1ce   :  { %v595_v52 = vmul.f32 0.6931472, %v880_v47  ;;  %889 = vlog2.f32 %v570_v49  ;;  %v562_v53 = vld [vmem:[#allocation2 + $0x10] sm:$0xff]  ;;  %553 = vst.msk [vmem:[#allocation2 + $0x60] sm:$0xff] %vm15_vm2, %v536_v46 }
 0x1cf   :  { %v609_v55 = vadd.f32 2.5, %v579_v48  ;;  %891 = vlog2.f32 %v562_v53  ;;  %554 = vst.msk [vmem:[#allocation2 + $0x68] sm:$0xff] %vm15_vm2, %v537_v50  ;;  %v505_v43 = vpop.xlane.xlu0 %504 }
 0x1d0   :  { %v882_v56 = vpop.eup %881  ;;  %v617_v57 = vadd.f32 2.5, %v595_v52  ;;  %v507_v58 = vpop.xlane.xlu1 %506  ;;  %v530_v59 = vadd.f32 %v505_v43, %v482_v51 }
 0x1d1   :  { %v884_v60 = vpop.eup %883  ;;  %625 = vst.msk [vmem:[%s1403_s2 + $0x8] sm:$0xff] %vm15_vm2, %v609_v55  ;;  %v577_v61 = vmul.f32 0.6931472, %v882_v56  ;;  %v564_v62 = vld [vmem:[#allocation2 + $0x20] sm:$0xff]  ;;  %v531_v63 = vadd.f32 %v507_v58, %v483_v54 }
 0x1d2   :  { %633 = vst.msk [vmem:[%s1403_s2 + $0x48] sm:$0xff] %vm15_vm2, %v617_v57  ;;  %v583_v1 = vmul.f32 0.6931472, %v884_v60  ;;  %v565_v2 = vld [vmem:[#allocation2 + $0x28] sm:$0xff]  ;;  %893 = vlog2.f32 %v564_v62  ;;  %547 = vst.msk [vmem:[#allocation2 + $0x30] sm:$0xff] %vm15_vm2, %v530_v59 }
 0x1d3   :  { %v608_v4 = vadd.f32 2.5, %v577_v61  ;;  %895 = vlog2.f32 %v565_v2  ;;  %548 = vst.msk [vmem:[#allocation2 + $0x38] sm:$0xff] %vm15_vm2, %v531_v63  ;;  %v521_v5 = vpop.xlane.xlu0 %520 }
 0x1d4   :  { %v886_v6 = vpop.eup %885  ;;  %v611_v7 = vadd.f32 2.5, %v583_v1  ;;  %v523_v8 = vpop.xlane.xlu1 %522  ;;  %v538_v9 = vadd.f32 %v521_v5, %v490_v0 }
 0x1d5   :  { %v888_v10 = vpop.eup %887  ;;  %624 = vst.msk [vmem:[%s1403_s2] sm:$0xff] %vm15_vm2, %v608_v4  ;;  %v593_v11 = vmul.f32 0.6931472, %v886_v6  ;;  %v572_v45 = vld [vmem:[#allocation2 + $0x60] sm:$0xff]  ;;  %v539_v12 = vadd.f32 %v523_v8, %v491_v3 }
 0x1d6   :  { %627 = vst.msk [vmem:[%s1403_s2 + $0x18] sm:$0xff] %vm15_vm2, %v611_v7  ;;  %v599_v13 = vmul.f32 0.6931472, %v888_v10  ;;  %v573_v14 = vld [vmem:[#allocation2 + $0x68] sm:$0xff]  ;;  %897 = vlog2.f32 %v572_v45  ;;  %555 = vst.msk [vmem:[#allocation2 + $0x70] sm:$0xff] %vm15_vm2, %v538_v9 }
 0x1d7   :  { %v616_v15 = vadd.f32 2.5, %v593_v11  ;;  %899 = vlog2.f32 %v573_v14  ;;  %556 = vst.msk [vmem:[#allocation2 + $0x78] sm:$0xff] %vm15_vm2, %v539_v12 }
 0x1d8   :  { %v890_v16 = vpop.eup %889  ;;  %v619_v17 = vadd.f32 2.5, %v599_v13 }
 0x1d9   :  { %v892_v18 = vpop.eup %891  ;;  %632 = vst.msk [vmem:[%s1403_s2 + $0x40] sm:$0xff] %vm15_vm2, %v616_v15  ;;  %v597_v19 = vmul.f32 0.6931472, %v890_v16  ;;  %v566_v20 = vld [vmem:[#allocation2 + $0x30] sm:$0xff] }
 0x1da   :  { %635 = vst.msk [vmem:[%s1403_s2 + $0x58] sm:$0xff] %vm15_vm2, %v619_v17  ;;  %v581_v21 = vmul.f32 0.6931472, %v892_v18  ;;  %v567_v22 = vld [vmem:[#allocation2 + $0x38] sm:$0xff]  ;;  %901 = vlog2.f32 %v566_v20 }
 0x1db   :  { %v618_v23 = vadd.f32 2.5, %v597_v19  ;;  %903 = vlog2.f32 %v567_v22 }
 0x1dc   :  { %v894_v24 = vpop.eup %893  ;;  %v610_v25 = vadd.f32 2.5, %v581_v21 }
 0x1dd   :  { %v896_v26 = vpop.eup %895  ;;  %634 = vst.msk [vmem:[%s1403_s2 + $0x50] sm:$0xff] %vm15_vm2, %v618_v23  ;;  %v585_v27 = vmul.f32 0.6931472, %v894_v24  ;;  %v574_v28 = vld [vmem:[#allocation2 + $0x70] sm:$0xff] }
 0x1de   :  { %626 = vst.msk [vmem:[%s1403_s2 + $0x10] sm:$0xff] %vm15_vm2, %v610_v25  ;;  %v587_v29 = vmul.f32 0.6931472, %v896_v26  ;;  %v575_v30 = vld [vmem:[#allocation2 + $0x78] sm:$0xff]  ;;  %905 = vlog2.f32 %v574_v28 }
 0x1df   :  { %v612_v31 = vadd.f32 2.5, %v585_v27  ;;  %907 = vlog2.f32 %v575_v30 }
 0x1e0   :  { %v898_v32 = vpop.eup %897  ;;  %v613_v33 = vadd.f32 2.5, %v587_v29 }
 0x1e1   :  { %v900_v34 = vpop.eup %899  ;;  %628 = vst.msk [vmem:[%s1403_s2 + $0x20] sm:$0xff] %vm15_vm2, %v612_v31  ;;  %v601_v35 = vmul.f32 0.6931472, %v898_v32 }
 0x1e2   :  { %629 = vst.msk [vmem:[%s1403_s2 + $0x28] sm:$0xff] %vm15_vm2, %v613_v33  ;;  %v603_v36 = vmul.f32 0.6931472, %v900_v34 }
 0x1e3   :  { %v620_v37 = vadd.f32 2.5, %v601_v35 }
 0x1e4   :  { %v902_v38 = vpop.eup %901  ;;  %v621_v39 = vadd.f32 2.5, %v603_v36 }
 0x1e5   :  { %v904_v40 = vpop.eup %903  ;;  %636 = vst.msk [vmem:[%s1403_s2 + $0x60] sm:$0xff] %vm15_vm2, %v620_v37  ;;  %v589_v41 = vmul.f32 0.6931472, %v902_v38 }
 0x1e6   :  { %637 = vst.msk [vmem:[%s1403_s2 + $0x68] sm:$0xff] %vm15_vm2, %v621_v39  ;;  %v591_v42 = vmul.f32 0.6931472, %v904_v40 }
 0x1e7   :  { %v614_v44 = vadd.f32 2.5, %v589_v41 }
 0x1e8   :  { %v906_v46 = vpop.eup %905  ;;  %v615_v47 = vadd.f32 2.5, %v591_v42 }
 0x1e9   :  { %v908_v48 = vpop.eup %907  ;;  %630 = vst.msk [vmem:[%s1403_s2 + $0x30] sm:$0xff] %vm15_vm2, %v614_v44  ;;  %v605_v49 = vmul.f32 0.6931472, %v906_v46 }
 0x1ea   :  { %631 = vst.msk [vmem:[%s1403_s2 + $0x38] sm:$0xff] %vm15_vm2, %v615_v47  ;;  %v607_v50 = vmul.f32 0.6931472, %v908_v48 }
 0x1eb   :  { %v622_v51 = vadd.f32 2.5, %v605_v49 }
 0x1ec   :  { %v623_v52 = vadd.f32 2.5, %v607_v50 }
 0x1ed   :  { %638 = vst.msk [vmem:[%s1403_s2 + $0x70] sm:$0xff] %vm15_vm2, %v622_v51 }
 0x1ee   :  { %639 = vst.msk [vmem:[%s1403_s2 + $0x78] sm:$0xff] %vm15_vm2, %v623_v52 }

</bundles_post_ra>
